<compile_context>
chip_gen: v7x
topology: tpu7x:2x2x1
jax: 0.10.0
libtpu: 0.0.40
codegen_flags: <defaults>
</compile_context>

<pallas_src>
import functools

import jax
import jax.numpy as jnp
from jax import lax
from jax.experimental import pallas as pl
from jax.experimental.pallas import tpu as pltpu


def mlp_adj_kernel(n_valid, xj_ref, w1_ref, b1_ref, w2_ref, b2_ref,
                   w3_ref, b3_ref, w4_ref, b4_ref, w5_ref, b5_ref, out_ref):
    """One grid step: TB batch elements x TI i-rows against all Np j-columns."""
    TB, TI, Np = out_ref.shape
    D = xj_ref.shape[2]

    # x is pre-L2-normalized + bf16 in the wrapper; the i-row tile is a slice of the
    # already-resident j-block (no separate xi DMA stream).
    i0 = pl.multiple_of(pl.program_id(1) * TI, 8)
    xj = xj_ref[...]                            # [TB, Np, D] bf16
    xi = xj_ref[:, pl.ds(i0, TI), :]            # [TB, TI, D] bf16

    # Pairwise elementwise product -> [M, D] bf16 MXU operand rows, M = TB*TI*Np.
    pair = (xi[:, :, None, :] * xj[:, None, :, :]).reshape(TB * TI * Np, D)

    def stage(h, w_ref, b_ref):
        # 1x1 conv + folded BN + LeakyReLU(0.01); bf16 operands, f32 accumulate,
        # bf16-resident output (cast fused into the activation epilogue).
        y = jnp.dot(h, w_ref[...], preferred_element_type=jnp.float32) + b_ref[...]
        return jnp.maximum(y, 0.01 * y).astype(jnp.bfloat16)

    h = stage(pair, w1_ref, b1_ref)
    h = stage(h, w2_ref, b2_ref)
    h = stage(h, w3_ref, b3_ref)
    h = stage(h, w4_ref, b4_ref)

    # conv_last on the MXU: [M, C4] @ [C4, 1], then reshape to [TB, TI, Np].
    logits = jnp.dot(h, w5_ref[...], preferred_element_type=jnp.float32)
    logits = logits.reshape(TB, TI, Np) + b5_ref[0, 0]

    # Masked softmax over j: diagonal logits zeroed (matches PyTorch matrix*(1-eye)),
    # padded j-columns (>= n_valid) excluded, identity added back afterwards.
    rows = lax.broadcasted_iota(jnp.int32, (TI, Np), 0) + i0
    cols = lax.broadcasted_iota(jnp.int32, (TI, Np), 1)
    eye = rows == cols
    col_ok = cols < n_valid
    masked = jnp.where(col_ok[None], jnp.where(eye[None], 0.0, logits), -1e30)
    m = jnp.max(masked, axis=-1, keepdims=True)
    e = jnp.exp(masked - m)
    inv = pl.reciprocal(jnp.sum(e, axis=-1, keepdims=True), approx=True)
    out_ref[...] = e * inv + eye[None].astype(jnp.float32)


def _largest_divisor_leq(n, cap):
    cap = max(1, min(n, cap))
    for d in range(cap, 0, -1):
        if n % d == 0:
            return d
    return 1


def _vmem_capacity_bytes():
    """Generation-aware VMEM capacity; conservative (v7x per-core) fallback on failure."""
    try:
        info = pltpu.get_tpu_info()
        for attr in ("vmem_capacity_bytes", "vmem_size_bytes", "vmem_bytes"):
            v = getattr(info, attr, None)
            if v:
                return int(v)
    except Exception:
        pass
    return 64 * (1 << 20)


def mlp_forward(x, params, *, vmem_budget_bytes=None):
    """x: [B, N, D] (dims==3 path) or [N, D] (dims==2 path). Returns [B, N, N] or [N, N]."""
    squeeze = x.ndim == 2
    if squeeze:
        x = x[None]
    B, N, D = x.shape
    w1, b1, w2, b2, w3, b3, w4, b4, w5, b5 = params
    c1, c2, c3, c4 = w1.shape[1], w2.shape[1], w3.shape[1], w4.shape[1]

    # Generation-aware budgets: v5e/v6e have 128 MiB VMEM, v7x only 64 MiB per TensorCore.
    cap = _vmem_capacity_bytes()
    big_vmem = cap >= 100 * (1 << 20)
    if vmem_budget_bytes is None:
        vmem_budget_bytes = (40 if big_vmem else 20) * (1 << 20)
    limit_cap = (100 if big_vmem else 52) * (1 << 20)

    # Pre-normalize once in f32 (F.normalize semantics), then cast to bf16 for DMA/MXU.
    nrm = jnp.sqrt(jnp.sum(x * x, axis=-1, keepdims=True))
    xn = (x / jnp.maximum(nrm, 1e-12)).astype(jnp.bfloat16)

    # Per pair-row live bytes: bf16 pair + bf16-resident activations + transient f32 dot
    # result + f32 softmax/output slack.
    cs = (c1, c2, c3, c4)
    per_row = 2 * D + 2 * sum(cs) + 4 * max(cs) + 32

    # i-row tile: a multiple of 8 sized from the budget. Prefer a divisor of N8 when it is
    # close to the cap (no padding); otherwise pad N up to a multiple of the tile so the tile
    # never collapses to a tiny divisor (padded j-columns are masked in the kernel).
    N8 = -(-N // 8) * 8
    rows_cap = max(N8, (vmem_budget_bytes - 4 * N8 * D) // per_row)
    ti_cap = min(N8, max(8, (rows_cap // N8) // 8 * 8))
    ti_div = _largest_divisor_leq(N8 // 8, max(1, ti_cap // 8)) * 8
    ti = ti_div if 3 * ti_div >= 2 * ti_cap else ti_cap
    N_pad = -(-N // ti) * ti

    # If the whole padded N fits in one step, also fuse batch elements.
    tb = 1
    if ti == N_pad and B > 1:
        per_batch = N_pad * N_pad * per_row + 4 * N_pad * D
        tb = _largest_divisor_leq(B, max(1, vmem_budget_bytes // per_batch))
    # Guarantee >= 2 grid steps so both v7x TensorCores get work (both axes are "parallel").
    if (B // tb) * (N_pad // ti) == 1:
        if B > 1:
            tb = _largest_divisor_leq(B, B // 2)
        elif N_pad >= 16 and (N_pad // 2) % 8 == 0:
            ti = N_pad // 2
    grid = (B // tb, N_pad // ti)

    if N_pad != N:
        xn = jnp.pad(xn, ((0, 0), (0, N_pad - N), (0, 0)))

    # Weights as bf16 (native MXU path); biases stay f32; b5 scalar rides in SMEM.
    w1b, w2b, w3b, w4b, w5b = (w.astype(jnp.bfloat16) for w in (w1, w2, w3, w4, w5))

    # VMEM estimate: double-buffered params + j-block + output block + live intermediates.
    param_bytes = sum(int(a.size) * a.dtype.itemsize
                      for a in (w1b, b1, w2b, b2, w3b, b3, w4b, b4, w5b))
    est = (2 * param_bytes
           + 2 * tb * N_pad * D * 2
           + 2 * tb * ti * N_pad * 4
           + tb * ti * N_pad * per_row
           + (2 << 20))
    vmem_limit = int(min(limit_cap, max(32 << 20, (3 * est) // 2)))

    def full(a):
        nd = a.ndim
        return pl.BlockSpec(a.shape, lambda b, it, _nd=nd: (0,) * _nd)

    out = pl.pallas_call(
        functools.partial(mlp_adj_kernel, N),
        out_shape=jax.ShapeDtypeStruct((B, N_pad, N_pad), jnp.float32),
        grid_spec=pltpu.PrefetchScalarGridSpec(
            num_scalar_prefetch=0,
            grid=grid,
            in_specs=[
                pl.BlockSpec((tb, N_pad, D), lambda b, it: (b, 0, 0)),   # normalized bf16 x
                full(w1b), full(b1), full(w2b), full(b2),
                full(w3b), full(b3), full(w4b), full(b4),
                full(w5b),
                pl.BlockSpec(memory_space=pltpu.MemorySpace.SMEM),       # b5 scalar
            ],
            out_specs=pl.BlockSpec((tb, ti, N_pad), lambda b, it: (b, it, 0)),
        ),
        compiler_params=pltpu.CompilerParams(
            dimension_semantics=("parallel", "parallel"),
            vmem_limit_bytes=vmem_limit,
        ),
    )(xn, w1b, b1, w2b, b2, w3b, b3, w4b, b4, w5b, b5)

    if N_pad != N:
        out = out[:, :N, :N]
    return out[0] if squeeze else out


def _pad_c(c, lane=128):
    # Pad sub-lane channel counts (e.g. 96) up to one full 128-lane vreg; leave >=128 as-is.
    return lane if c < lane else c


def init_params(key, in_dim, hidden=96, ratio=(2, 2, 1, 1)):
    """Deterministic synthetic parameters; BN (eval mode) folded into conv weights.
    Hidden channels below 128 are zero-padded to 128 (mathematically exact: padded channels
    have zero weight columns and zero bias, so they stay zero through LeakyReLU)."""
    cs = [in_dim] + [hidden * r for r in ratio]
    eps = 1e-5
    keys = jax.random.split(key, 22)
    ki = 0
    params = []
    cin, cin_p = cs[0], cs[0]
    for l in range(4):
        cout = cs[l + 1]
        cout_p = _pad_c(cout)
        w = jax.random.normal(keys[ki], (cin, cout), jnp.float32) / jnp.sqrt(cin); ki += 1
        gamma = jax.random.uniform(keys[ki], (cout,), jnp.float32, 0.5, 1.5); ki += 1
        beta = 0.1 * jax.random.normal(keys[ki], (cout,), jnp.float32); ki += 1
        mean = 0.1 * jax.random.normal(keys[ki], (cout,), jnp.float32); ki += 1
        var = jax.random.uniform(keys[ki], (cout,), jnp.float32, 0.5, 1.5); ki += 1
        scale = gamma / jnp.sqrt(var + eps)
        w_eff = w * scale[None, :]
        b_eff = beta - mean * scale
        w_pad = jnp.zeros((cin_p, cout_p), jnp.float32).at[:cin, :cout].set(w_eff)
        b_pad = jnp.zeros((1, cout_p), jnp.float32).at[:, :cout].set(b_eff)
        params += [w_pad, b_pad]
        cin, cin_p = cout, cout_p
    w5 = jax.random.normal(keys[ki], (cin, 1), jnp.float32) / jnp.sqrt(cin); ki += 1
    b5 = 0.1 * jax.random.normal(keys[ki], (), jnp.float32); ki += 1
    w5_pad = jnp.zeros((cin_p, 1), jnp.float32).at[:cin, :].set(w5)
    params += [w5_pad, jnp.reshape(b5, (1, 1))]
    return tuple(params)


def reference(x, params):
    """Pure-JAX f32 reference mirroring the PyTorch forward (eval-mode BN folded)."""
    squeeze = x.ndim == 2
    if squeeze:
        x = x[None]
    w1, b1, w2, b2, w3, b3, w4, b4, w5, b5 = params
    nrm = jnp.sqrt(jnp.sum(x * x, axis=-1, keepdims=True))
    xn = x / jnp.maximum(nrm, 1e-12)
    h = xn[:, :, None, :] * xn[:, None, :, :]            # [B, N, N, D]
    for w, b in ((w1, b1), (w2, b2), (w3, b3), (w4, b4)):
        y = h @ w + b
        h = jnp.where(y > 0, y, 0.01 * y)
    logits = (h @ w5)[..., 0] + b5[0, 0]                 # [B, N, N]
    N = x.shape[1]
    eye = jnp.eye(N, dtype=logits.dtype)
    sm = jax.nn.softmax(logits * (1.0 - eye), axis=-1) + eye
    return sm[0] if squeeze else sm


if __name__ == "__main__":
    key = jax.random.PRNGKey(0)
    kx, kp, kx2, kx3 = jax.random.split(key, 4)

    # Small demo shape (batch split into 2 grid steps so both v7x cores get work).
    B, N, D = 2, 8, 16
    params = init_params(kp, in_dim=D, hidden=96, ratio=(2, 2, 1, 1))
    x = jax.random.normal(kx, (B, N, D), jnp.float32)
    out = mlp_forward(x, params)
    jax.block_until_ready(out)
    ref = reference(x, params)
    assert out.shape == (B, N, N)
    # bf16 MXU operands / bf16-resident activations + approx reciprocal vs f32 reference.
    err = float(jnp.max(jnp.abs(out - ref)))
    assert err < 3e-2, f"mismatch vs reference: {err}"

    # Larger N with a deliberately small VMEM budget to exercise i-row tiling (grid > 1 on
    # both axes, off-diagonal i-tiles).
    N2 = 64
    x2 = jax.random.normal(kx2, (B, N2, D), jnp.float32)
    out2 = mlp_forward(x2, params, vmem_budget_bytes=6 * 1024 * 1024)
    jax.block_until_ready(out2)
    ref2 = reference(x2, params)
    assert out2.shape == (B, N2, N2)
    err2 = float(jnp.max(jnp.abs(out2 - ref2)))
    assert err2 < 3e-2, f"tiled mismatch vs reference: {err2}"

    # Non-multiple-of-8 N exercises the padded-column masking path (N padded to 16).
    N3 = 12
    x3 = jax.random.normal(kx3, (B, N3, D), jnp.float32)
    out3 = mlp_forward(x3, params)
    jax.block_until_ready(out3)
    ref3 = reference(x3, params)
    assert out3.shape == (B, N3, N3)
    err3 = float(jnp.max(jnp.abs(out3 - ref3)))
    assert err3 < 3e-2, f"padded mismatch vs reference: {err3}"

    print("KERNEL_OK")
</pallas_src>

<mosaic_0001>
module attributes {stable_mosaic.version = 11 : i64} {
  func.func @mlp_adj_kernel(%arg0: i32, %arg1: i32, %arg2: memref<1x8x16xbf16, #tpu.memory_space<vmem>>, %arg3: memref<16x192xbf16, #tpu.memory_space<vmem>>, %arg4: memref<1x192xf32, #tpu.memory_space<vmem>>, %arg5: memref<192x192xbf16, #tpu.memory_space<vmem>>, %arg6: memref<1x192xf32, #tpu.memory_space<vmem>>, %arg7: memref<192x128xbf16, #tpu.memory_space<vmem>>, %arg8: memref<1x128xf32, #tpu.memory_space<vmem>>, %arg9: memref<128x128xbf16, #tpu.memory_space<vmem>>, %arg10: memref<1x128xf32, #tpu.memory_space<vmem>>, %arg11: memref<128x1xbf16, #tpu.memory_space<vmem>>, %arg12: memref<1x1xf32, #tpu.memory_space<smem>>, %arg13: memref<1x8x8xf32, #tpu.memory_space<vmem>>) attributes {dimension_semantics = [#tpu.dimension_semantics<parallel>, #tpu.dimension_semantics<parallel>], iteration_bounds = array<i64: 2, 1>, scalar_prefetch = 0 : i64, scratch_operands = 0 : i64, tpu.core_type = #tpu.core_type<tc>, window_params = [{transform_indices = @transform_0, window_bounds = array<i64: 1, 8, 16>}, {pipeline_mode = #tpu.pipeline_mode<synchronous>, transform_indices = @transform_1, window_bounds = array<i64: 16, 192>}, {pipeline_mode = #tpu.pipeline_mode<synchronous>, transform_indices = @transform_2, window_bounds = array<i64: 1, 192>}, {pipeline_mode = #tpu.pipeline_mode<synchronous>, transform_indices = @transform_3, window_bounds = array<i64: 192, 192>}, {pipeline_mode = #tpu.pipeline_mode<synchronous>, transform_indices = @transform_4, window_bounds = array<i64: 1, 192>}, {pipeline_mode = #tpu.pipeline_mode<synchronous>, transform_indices = @transform_5, window_bounds = array<i64: 192, 128>}, {pipeline_mode = #tpu.pipeline_mode<synchronous>, transform_indices = @transform_6, window_bounds = array<i64: 1, 128>}, {pipeline_mode = #tpu.pipeline_mode<synchronous>, transform_indices = @transform_7, window_bounds = array<i64: 128, 128>}, {pipeline_mode = #tpu.pipeline_mode<synchronous>, transform_indices = @transform_8, window_bounds = array<i64: 1, 128>}, {pipeline_mode = #tpu.pipeline_mode<synchronous>, transform_indices = @transform_9, window_bounds = array<i64: 128, 1>}, {transform_indices = @transform_10, window_bounds = array<i64: 1, 1>}, {transform_indices = @transform_11, window_bounds = array<i64: 1, 8, 8>}]} {
    %c8_i32 = arith.constant 8 : i32
    %0 = arith.muli %arg1, %c8_i32 : i32
    %1 = tpu.assume_multiple %0, 8 : i32
    %c0 = arith.constant 0 : index
    %c0_0 = arith.constant 0 : index
    %c0_1 = arith.constant 0 : index
    %2 = vector.load %arg2[%c0, %c0_0, %c0_1] : memref<1x8x16xbf16, #tpu.memory_space<vmem>>, vector<1x8x16xbf16>
    %c0_2 = arith.constant 0 : index
    %3 = arith.index_cast %1 : i32 to index
    %c0_3 = arith.constant 0 : index
    %4 = vector.load %arg2[%c0_2, %3, %c0_3] : memref<1x8x16xbf16, #tpu.memory_space<vmem>>, vector<1x8x16xbf16>
    %5 = vector.shape_cast %4 : vector<1x8x16xbf16> to vector<1x8x1x16xbf16>
    %6 = vector.shape_cast %2 : vector<1x8x16xbf16> to vector<1x1x8x16xbf16>
    %7 = vector.broadcast %5 : vector<1x8x1x16xbf16> to vector<1x8x8x16xbf16>
    %8 = vector.broadcast %6 : vector<1x1x8x16xbf16> to vector<1x8x8x16xbf16>
    %9 = arith.mulf %7, %8 : vector<1x8x8x16xbf16>
    %10 = vector.shape_cast %9 : vector<1x8x8x16xbf16> to vector<64x16xbf16>
    %c0_4 = arith.constant 0 : index
    %c0_5 = arith.constant 0 : index
    %11 = vector.load %arg3[%c0_4, %c0_5] : memref<16x192xbf16, #tpu.memory_space<vmem>>, vector<16x192xbf16>
    %cst = arith.constant dense<0.000000e+00> : vector<64x192xf32>
    %12 = tpu.matmul %10, %11, %cst {dimension_numbers = #tpu.dot_dimension_numbers<[1], [0], [0], [1], [0, 0, 1, 1], [], []>} : vector<64x16xbf16>, vector<16x192xbf16>, vector<64x192xf32> -> vector<64x192xf32>
    %c0_6 = arith.constant 0 : index
    %c0_7 = arith.constant 0 : index
    %13 = vector.load %arg4[%c0_6, %c0_7] : memref<1x192xf32, #tpu.memory_space<vmem>>, vector<1x192xf32>
    %14 = vector.broadcast %13 : vector<1x192xf32> to vector<64x192xf32>
    %15 = arith.addf %12, %14 : vector<64x192xf32>
    %cst_8 = arith.constant 0.00999999977 : f32
    %16 = vector.broadcast %cst_8 : f32 to vector<64x192xf32>
    %17 = arith.mulf %16, %15 : vector<64x192xf32>
    %18 = arith.maximumf %15, %17 : vector<64x192xf32>
    %19 = arith.truncf %18 : vector<64x192xf32> to vector<64x192xbf16>
    %c0_9 = arith.constant 0 : index
    %c0_10 = arith.constant 0 : index
    %20 = vector.load %arg5[%c0_9, %c0_10] : memref<192x192xbf16, #tpu.memory_space<vmem>>, vector<192x192xbf16>
    %cst_11 = arith.constant dense<0.000000e+00> : vector<64x192xf32>
    %21 = tpu.matmul %19, %20, %cst_11 {dimension_numbers = #tpu.dot_dimension_numbers<[1], [0], [0], [1], [0, 0, 1, 1], [], []>} : vector<64x192xbf16>, vector<192x192xbf16>, vector<64x192xf32> -> vector<64x192xf32>
    %c0_12 = arith.constant 0 : index
    %c0_13 = arith.constant 0 : index
    %22 = vector.load %arg6[%c0_12, %c0_13] : memref<1x192xf32, #tpu.memory_space<vmem>>, vector<1x192xf32>
    %23 = vector.broadcast %22 : vector<1x192xf32> to vector<64x192xf32>
    %24 = arith.addf %21, %23 : vector<64x192xf32>
    %cst_14 = arith.constant 0.00999999977 : f32
    %25 = vector.broadcast %cst_14 : f32 to vector<64x192xf32>
    %26 = arith.mulf %25, %24 : vector<64x192xf32>
    %27 = arith.maximumf %24, %26 : vector<64x192xf32>
    %28 = arith.truncf %27 : vector<64x192xf32> to vector<64x192xbf16>
    %c0_15 = arith.constant 0 : index
    %c0_16 = arith.constant 0 : index
    %29 = vector.load %arg7[%c0_15, %c0_16] : memref<192x128xbf16, #tpu.memory_space<vmem>>, vector<192x128xbf16>
    %cst_17 = arith.constant dense<0.000000e+00> : vector<64x128xf32>
    %30 = tpu.matmul %28, %29, %cst_17 {dimension_numbers = #tpu.dot_dimension_numbers<[1], [0], [0], [1], [0, 0, 1, 1], [], []>} : vector<64x192xbf16>, vector<192x128xbf16>, vector<64x128xf32> -> vector<64x128xf32>
    %c0_18 = arith.constant 0 : index
    %c0_19 = arith.constant 0 : index
    %31 = vector.load %arg8[%c0_18, %c0_19] : memref<1x128xf32, #tpu.memory_space<vmem>>, vector<1x128xf32>
    %32 = vector.broadcast %31 : vector<1x128xf32> to vector<64x128xf32>
    %33 = arith.addf %30, %32 : vector<64x128xf32>
    %cst_20 = arith.constant 0.00999999977 : f32
    %34 = vector.broadcast %cst_20 : f32 to vector<64x128xf32>
    %35 = arith.mulf %34, %33 : vector<64x128xf32>
    %36 = arith.maximumf %33, %35 : vector<64x128xf32>
    %37 = arith.truncf %36 : vector<64x128xf32> to vector<64x128xbf16>
    %c0_21 = arith.constant 0 : index
    %c0_22 = arith.constant 0 : index
    %38 = vector.load %arg9[%c0_21, %c0_22] : memref<128x128xbf16, #tpu.memory_space<vmem>>, vector<128x128xbf16>
    %cst_23 = arith.constant dense<0.000000e+00> : vector<64x128xf32>
    %39 = tpu.matmul %37, %38, %cst_23 {dimension_numbers = #tpu.dot_dimension_numbers<[1], [0], [0], [1], [0, 0, 1, 1], [], []>} : vector<64x128xbf16>, vector<128x128xbf16>, vector<64x128xf32> -> vector<64x128xf32>
    %c0_24 = arith.constant 0 : index
    %c0_25 = arith.constant 0 : index
    %40 = vector.load %arg10[%c0_24, %c0_25] : memref<1x128xf32, #tpu.memory_space<vmem>>, vector<1x128xf32>
    %41 = vector.broadcast %40 : vector<1x128xf32> to vector<64x128xf32>
    %42 = arith.addf %39, %41 : vector<64x128xf32>
    %cst_26 = arith.constant 0.00999999977 : f32
    %43 = vector.broadcast %cst_26 : f32 to vector<64x128xf32>
    %44 = arith.mulf %43, %42 : vector<64x128xf32>
    %45 = arith.maximumf %42, %44 : vector<64x128xf32>
    %46 = arith.truncf %45 : vector<64x128xf32> to vector<64x128xbf16>
    %c0_27 = arith.constant 0 : index
    %c0_28 = arith.constant 0 : index
    %47 = vector.load %arg11[%c0_27, %c0_28] : memref<128x1xbf16, #tpu.memory_space<vmem>>, vector<128x1xbf16>
    %cst_29 = arith.constant dense<0.000000e+00> : vector<64x1xf32>
    %48 = tpu.matmul %46, %47, %cst_29 {dimension_numbers = #tpu.dot_dimension_numbers<[1], [0], [0], [1], [0, 0, 1, 1], [], []>} : vector<64x128xbf16>, vector<128x1xbf16>, vector<64x1xf32> -> vector<64x1xf32>
    %49 = vector.shape_cast %48 : vector<64x1xf32> to vector<1x8x8xf32>
    %c0_30 = arith.constant 0 : index
    %c0_31 = arith.constant 0 : index
    %50 = memref.load %arg12[%c0_30, %c0_31] : memref<1x1xf32, #tpu.memory_space<smem>>
    %51 = vector.broadcast %50 : f32 to vector<1x8x8xf32>
    %52 = arith.addf %49, %51 : vector<1x8x8xf32>
    %53 = tpu.iota {dimensions = array<i32: 0>} : vector<8x8xi32>
    %54 = vector.broadcast %1 : i32 to vector<8x8xi32>
    %55 = arith.addi %53, %54 : vector<8x8xi32>
    %56 = tpu.iota {dimensions = array<i32: 1>} : vector<8x8xi32>
    %57 = arith.cmpi eq, %55, %56 : vector<8x8xi32>
    %c8_i32_32 = arith.constant 8 : i32
    %58 = vector.broadcast %c8_i32_32 : i32 to vector<8x8xi32>
    %59 = arith.cmpi slt, %56, %58 : vector<8x8xi32>
    %60 = vector.shape_cast %59 : vector<8x8xi1> to vector<1x8x8xi1>
    %61 = vector.shape_cast %57 : vector<8x8xi1> to vector<1x8x8xi1>
    %cst_33 = arith.constant 0.000000e+00 : f32
    %62 = vector.broadcast %cst_33 : f32 to vector<1x8x8xf32>
    %63 = arith.select %61, %62, %52 : vector<1x8x8xi1>, vector<1x8x8xf32>
    %cst_34 = arith.constant -1.000000e+30 : f32
    %64 = vector.broadcast %cst_34 : f32 to vector<1x8x8xf32>
    %65 = arith.select %60, %63, %64 : vector<1x8x8xi1>, vector<1x8x8xf32>
    %cst_35 = arith.constant dense<0xFF800000> : vector<1x8xf32>
    %66 = vector.multi_reduction <maximumf>, %65, %cst_35 [2] : vector<1x8x8xf32> to vector<1x8xf32>
    %67 = vector.shape_cast %66 : vector<1x8xf32> to vector<1x8x1xf32>
    %68 = vector.broadcast %67 : vector<1x8x1xf32> to vector<1x8x8xf32>
    %69 = arith.subf %65, %68 : vector<1x8x8xf32>
    %70 = math.exp %69 : vector<1x8x8xf32>
    %cst_36 = arith.constant dense<0.000000e+00> : vector<1x8xf32>
    %71 = vector.multi_reduction <add>, %70, %cst_36 [2] : vector<1x8x8xf32> to vector<1x8xf32>
    %72 = vector.shape_cast %71 : vector<1x8xf32> to vector<1x8x1xf32>
    %73 = tpu.reciprocal %72 {approx = true} : vector<1x8x1xf32> -> vector<1x8x1xf32>
    %74 = vector.broadcast %73 : vector<1x8x1xf32> to vector<1x8x8xf32>
    %75 = arith.mulf %70, %74 : vector<1x8x8xf32>
    %76 = vector.shape_cast %57 : vector<8x8xi1> to vector<1x8x8xi1>
    %77 = arith.extui %76 : vector<1x8x8xi1> to vector<1x8x8xi32>
    %78 = arith.sitofp %77 : vector<1x8x8xi32> to vector<1x8x8xf32>
    %79 = arith.addf %75, %78 : vector<1x8x8xf32>
    %c0_37 = arith.constant 0 : index
    %c0_38 = arith.constant 0 : index
    %c0_39 = arith.constant 0 : index
    %80 = vector.load %arg13[%c0_37, %c0_38, %c0_39] : memref<1x8x8xf32, #tpu.memory_space<vmem>>, vector<1x8x8xf32>
    tpu.vector_store %arg13[%c0_37, %c0_38, %c0_39], %79 {strides = array<i32>} : memref<1x8x8xf32, #tpu.memory_space<vmem>>, vector<1x8x8xf32>,
    return
  }
  func.func @transform_0(%arg0: i32, %arg1: i32) -> (i32, i32, i32) {
    %c0_i32 = arith.constant 0 : i32
    %c0_i32_0 = arith.constant 0 : i32
    %c0_i32_1 = arith.constant 0 : i32
    return %arg0, %c0_i32, %c0_i32_0 : i32, i32, i32
  }
  func.func @transform_1(%arg0: i32, %arg1: i32) -> (i32, i32) {
    %c0_i32 = arith.constant 0 : i32
    %c0_i32_0 = arith.constant 0 : i32
    %c0_i32_1 = arith.constant 0 : i32
    return %c0_i32, %c0_i32_0 : i32, i32
  }
  func.func @transform_2(%arg0: i32, %arg1: i32) -> (i32, i32) {
    %c0_i32 = arith.constant 0 : i32
    %c0_i32_0 = arith.constant 0 : i32
    %c0_i32_1 = arith.constant 0 : i32
    return %c0_i32, %c0_i32_0 : i32, i32
  }
  func.func @transform_3(%arg0: i32, %arg1: i32) -> (i32, i32) {
    %c0_i32 = arith.constant 0 : i32
    %c0_i32_0 = arith.constant 0 : i32
    %c0_i32_1 = arith.constant 0 : i32
    return %c0_i32, %c0_i32_0 : i32, i32
  }
  func.func @transform_4(%arg0: i32, %arg1: i32) -> (i32, i32) {
    %c0_i32 = arith.constant 0 : i32
    %c0_i32_0 = arith.constant 0 : i32
    %c0_i32_1 = arith.constant 0 : i32
    return %c0_i32, %c0_i32_0 : i32, i32
  }
  func.func @transform_5(%arg0: i32, %arg1: i32) -> (i32, i32) {
    %c0_i32 = arith.constant 0 : i32
    %c0_i32_0 = arith.constant 0 : i32
    %c0_i32_1 = arith.constant 0 : i32
    return %c0_i32, %c0_i32_0 : i32, i32
  }
  func.func @transform_6(%arg0: i32, %arg1: i32) -> (i32, i32) {
    %c0_i32 = arith.constant 0 : i32
    %c0_i32_0 = arith.constant 0 : i32
    %c0_i32_1 = arith.constant 0 : i32
    return %c0_i32, %c0_i32_0 : i32, i32
  }
  func.func @transform_7(%arg0: i32, %arg1: i32) -> (i32, i32) {
    %c0_i32 = arith.constant 0 : i32
    %c0_i32_0 = arith.constant 0 : i32
    %c0_i32_1 = arith.constant 0 : i32
    return %c0_i32, %c0_i32_0 : i32, i32
  }
  func.func @transform_8(%arg0: i32, %arg1: i32) -> (i32, i32) {
    %c0_i32 = arith.constant 0 : i32
    %c0_i32_0 = arith.constant 0 : i32
    %c0_i32_1 = arith.constant 0 : i32
    return %c0_i32, %c0_i32_0 : i32, i32
  }
  func.func @transform_9(%arg0: i32, %arg1: i32) -> (i32, i32) {
    %c0_i32 = arith.constant 0 : i32
    %c0_i32_0 = arith.constant 0 : i32
    %c0_i32_1 = arith.constant 0 : i32
    return %c0_i32, %c0_i32_0 : i32, i32
  }
  func.func @transform_10(%arg0: i32, %arg1: i32) -> (i32, i32) {
    %c0_i32 = arith.constant 0 : i32
    %c0_i32_0 = arith.constant 0 : i32
    %c0_i32_1 = arith.constant 0 : i32
    return %c0_i32, %c0_i32_0 : i32, i32
  }
  func.func @transform_11(%arg0: i32, %arg1: i32) -> (i32, i32, i32) {
    %c0_i32 = arith.constant 0 : i32
    %c0_i32_0 = arith.constant 0 : i32
    return %arg0, %arg1, %c0_i32 : i32, i32, i32
  }
}

</mosaic_0001>

<bundles_post_ra>
// kernel: tpu_custom_call.1
= control target key start
LH: loop header
LB: loop body
LE: loop exit
PB: predicated region body
PF: predicated region fallthrough
CT: control target
= control target key end

     0   :  { %s2642_s0 = inlined_call_operand.vmem [shape: bf16[2,8,16], index: 0, kind: input, shape index: {}]   ;;  %s2643_s1 = inlined_call_operand.vmem [shape: bf16[16,192], index: 1, kind: input, shape index: {}]   ;;  %s2644_s2 = inlined_call_operand.vmem [shape: f32[1,192], index: 2, kind: input, shape index: {}]   ;;  %s2645_s3 = inlined_call_operand.hbm [shape: bf16[192,192], index: 3, kind: input, shape index: {}]   ;;  %s2646_s4 = inlined_call_operand.vmem [shape: f32[1,192], index: 4, kind: input, shape index: {}]   ;;  %s2647_s5 = inlined_call_operand.hbm [shape: bf16[192,128], index: 5, kind: input, shape index: {}]   ;;  %s2648_s6 = inlined_call_operand.vmem [shape: f32[1,128], index: 6, kind: input, shape index: {}]   ;;  %s2649_s7 = inlined_call_operand.vmem [shape: bf16[128,128], index: 7, kind: input, shape index: {}]   ;;  %s2650_s8 = inlined_call_operand.vmem [shape: f32[1,128], index: 8, kind: input, shape index: {}]   ;;  %s2651_s9 = inlined_call_operand.vmem [shape: bf16[128,1], index: 9, kind: input, shape index: {}]   ;;  %s2652_s10 = inlined_call_operand.<no memory space> [shape: f32[1,1], index: 10, kind: input, shape index: {}]   ;;  %s2653_s11 = inlined_call_operand.hbm [shape: f32[2,8,8], index: 11, kind: output, shape index: {}]  }
   0x1   :  { %16 = sst [smem:[#allocation2]] %s2652_s10 }
   0x2   :  { %17 = vsyncpa [#allocation4], 0 }
   0x3   :  { %18 = vsyncpa [#allocation7], 0 }
   0x4   :  { %19 = vsyncpa [#allocation5], 0 }
   0x5   :  { %21 = vsyncpa [#allocation5 + $0x1], 0  ;;  %s2269_s19 = smov 0   ;;  %s2271_s20 = smov 0  }
   0x6   :  { %s2273_s21 = smov 0   ;;  %s2275_s22 = smov 0  }
   0x7   :  { %s2277_s23 = smov 0   ;;  %s2279_s24 = smov 0  }
   0x8 LB: > { %2663 = sst [smem:[#allocation12_spill]] %s2174_s19  ;;  %s1731_s10 = sadd.s32 4294967295, %s2194_s24   ;;  %s2194_s24 = sphi %s2279_s24, %s27_s24   ;;  %s2190_s23 = sphi %s2277_s23, %s2683_s23   ;;  %s2186_s22 = sphi %s2275_s22, %s2682_s22   ;;  %s2182_s21 = sphi %s2273_s21, %s2681_s21   ;;  %s2178_s20 = sphi %s2271_s20, %s2685_s20   ;;  %s2174_s19 = sphi %s2269_s19, %s2684_s19  }
   0x9   : > { %2664 = sst [smem:[#allocation13_spill]] %s2182_s21  ;;  %s1732_s25 = sadd.s32 4294967294, %s2194_s24  }
   0xa   : > { %2665 = sst [smem:[#allocation14_spill]] %s2190_s23  ;;  %s39_s26 = sadd.s32 1, %s2190_s23 }
   0xb   : > { %s284_s27 = sadd.s32 1, %s2182_s21  ;;  %p41_p0 = scmp.ge.s32.totalorder %s39_s26, 2 }
   0xc   : > { %p294_p1 = scmp.ne.s32.totalorder %s2182_s21, %s2178_s20  ;;  %p295_p2 = scmp.eq.s32.totalorder %s1731_s10, 1 }
   0xd   : > { %p300_p3 = scmp.ne.s32.totalorder %s2178_s20, %s2174_s19  ;;  %s2687_s26 = smov (%p41_p0, %s39_s26), 0 }
   0xe   : > { %2666 = sst [smem:[#allocation15_spill]] %s2687_s26  ;;  %p2309_p4 = por %p295_p2, %p294_p1 }
   0xf   : > { %p301_p5 = scmp.eq.s32.totalorder %s1732_s25, 1  ;;  %s279_s29 = ssub.s32 %s2190_s23, %s2687_s26 }
  0x10   : > { %s2667_s28 = scalar_select %p2309_p4, 1, 0 }
  0x11   : > { %p1733_p6 = scmp.ge.s32.totalorder %s2194_s24, 1  ;;  %p282_p7 = scmp.eq.s32.totalorder %s279_s29, 0 }
  0x12   : > { %p2316_p8 = por %p301_p5, %p300_p3  ;;  %p308_p9 = scmp.lt.s32.totalorder %s2194_s24, 3 }
  0x13   : > { %s2322_s12 = scalar_select %p282_p7, %s2182_s21, %s284_s27  }
  0x14   : > { %s2668_s30 = scalar_select %p2316_p8, 1, 0 }
  0x15   : > { %2670 = sst [smem:[#allocation17_spill]] %s2322_s12  ;;  %p2324_p10 = pnand %p1733_p6, %p308_p9 }
  0x16   : > { %2669 = sst [smem:[#allocation16_spill]] %s2668_s30  ;;  %p2328_p11 = scmp.eq.s32.totalorder %s1731_s10, 0 }
  0x17   : > { %s2671_s13 = scalar_select %p2324_p10, 1, 0 }
  0x18   : > { %s2672_s14 = scalar_select %p2328_p11, 1, 0 }
  0x19   : > { %p1906_p12 = pneg %p2324_p10  ;;  %s2196_s15 = smov [#allocation3]  }
  0x1a   : > { %s326_s16 = sshll.u32 %s2196_s15, 4  ;;  %s2197_s18 = smov [#allocation6]   ;;  %s327_s16 = int_to_ptr.vmem [resolvable:$true] %s326_s16 }
  0x1b   : > { %p2336_p13 = pnand %p2328_p11, %p1906_p12  ;;  %s342_s25 = sshll.u32 %s2197_s18, 4  ;;  %s2340_s25 = int_to_ptr.vmem [resolvable:$true] %s342_s25 }
  0x1c   : > { %s2052_s29 = scalar_lea.hbm %s2645_s3, 3072 }
  0x1d   : > { %p2053_p0 = scmp.ne.s32.totalorder %s2645_s3, %s2052_s29  ;;  %p2054_p1 = pneg %p2336_p13 }
  0x1e   : > { %p2059_p5 = scmp.lt.u32.totalorder %s2052_s29, %s2645_s3 }
  0x1f   : > { %p2055_p2 = pnand %p2054_p1, %p2053_p0 }
  0x21   : > { %p2056_p3 = pneg %p2055_p2 }
  0x23   : > { %p2061_p6 = pnand %p2059_p5, %p2056_p3 }
  0x25   : > { %2064 = shalt.err (!%p2061_p6)
}
  0x26   : > { %s2065_s18 = scalar_lea.vmem %s327_s16, 3072  ;;  %p2073_p8 = scmp.lt.s32.totalorder %s327_s16, %s327_s16 }
  0x27   : > { %p2066_p7 = scmp.ne.s32.totalorder %s327_s16, %s2065_s18  ;;  %p2074_p4 = scmp.lt.s32.totalorder %s2065_s18, %s2065_s18 }
  0x29   : > { %p2068_p9 = pnand %p2066_p7, %p2054_p1  ;;  %p2075_p11 = por %p2074_p4, %p2073_p8 }
  0x2b   : > { %p2069_p12 = pneg %p2068_p9 }
  0x2d   : > { %p2076_p10 = pnand %p2075_p11, %p2069_p12 }
  0x2f   : > { %2079 = shalt.err (!%p2076_p10)
}
  0x30   : > { %s2198_s23 = smov 128   ;;  %s2199_s26 = smov 8  }
  0x31   : > { %1909 = dma.hbm_to_vmem [thread:$0]  (!%p2336_p13), %s2645_s3, 3072, %s327_s16, [#allocation4], %s2198_s23, %s2198_s23, %s2199_s26  }
  0x32   : > { %s2080_s15 = scalar_lea.hbm %s2647_s5, 1536 }
  0x33   : > { %p2081_p0 = scmp.ne.s32.totalorder %s2647_s5, %s2080_s15  ;;  %p2087_p10 = scmp.lt.u32.totalorder %s2080_s15, %s2647_s5 }
  0x35   : > { %p2083_p4 = pnand %p2081_p0, %p2054_p1 }
  0x37   : > { %p2084_p8 = pneg %p2083_p4 }
  0x39   : > { %p2089_p11 = pnand %p2087_p10, %p2084_p8 }
  0x3b   : > { %2092 = shalt.err (!%p2089_p11)
}
  0x3c   : > { %s2093_s16 = scalar_lea.vmem %s2340_s25, 1536  ;;  %p2101_p6 = scmp.lt.s32.totalorder %s2340_s25, %s2340_s25 }
  0x3d   : > { %p2094_p2 = scmp.ne.s32.totalorder %s2340_s25, %s2093_s16  ;;  %p2102_p7 = scmp.lt.s32.totalorder %s2093_s16, %s2093_s16 }
  0x3f   : > { %p2096_p3 = pnand %p2094_p2, %p2054_p1  ;;  %p2103_p9 = por %p2102_p7, %p2101_p6 }
  0x41   : > { %p2097_p5 = pneg %p2096_p3 }
  0x43   : > { %p2104_p12 = pnand %p2103_p9, %p2097_p5 }
  0x45   : > { %2107 = shalt.err (!%p2104_p12)
}
  0x46   : > { %s2200_s19 = smov 64   ;;  %s2201_s21 = smov 4  }
  0x47   : > { %1912 = dma.hbm_to_vmem [thread:$0]  (!%p2336_p13), %s2647_s5, 1536, %s2340_s25, [#allocation7], %s2200_s19, %s2200_s19, %s2201_s21  }
  0x48   : > { %p2674_p0 = scmp.ne.s32.totalorder %s2671_s13, 0 }
  0x49   : > { %p2675_p1 = scmp.ne.s32.totalorder (!%p2674_p0), %s2672_s14, 0 }
  0x4a   : > { %380 = sbr.rel (%p2674_p0) target bundleno = 1709 (0x6ad), region = 64 }
  0x51   : > { %2161 = dma.done.wait (%p2675_p1), [#allocation4], 3072  }
  0x52   : > { %2163 = vsyncadd (%p2675_p1), [#allocation4], 4294964224 }
  0x53   : > { %2165 = dma.done.wait (%p2675_p1), [#allocation7], 1536  }
  0x54   : > { %2167 = vsyncadd (%p2675_p1), [#allocation7], 4294965760  ;;  %p423_p4 = scmp.lt.s32.totalorder %s2186_s22, 1  ;;  %v447_v0 = vlaneseq  ;;  %v2202_v1 = vmov 0   ;;  %v2203_v2 = vmov 1966171168  }
  0x55   : > { %661 = vmatprep.mubr.bf16.mxu0 %v2202_v1  ;;  %v445_v3 = vunpack.c.l.s4 %v2203_v2  ;;  %1979 = vset.pattern.permute.xlu1 %v2202_v1  ;;  %v1981_v7 = vld [vmem:[%s2643_s1 + $0x4] ss:$8 sps:$4 sm:$0xff]   ;;  %v1983_v8 = vld [vmem:[%s2643_s1] ss:$8 sps:$4 sm:$0xff]   ;;  %v1987_v15 = vld [vmem:[#allocation3 + $0x14] ss:$8 sps:$4 sm:$0xff]  }
  0x56   : > { %s424_s13 = scalar_select %p423_p4, %s2186_s22, 1  ;;  %v2404_v4 = vshrl.u32 %v447_v0, 7  ;;  %1980 = vset.pattern.permute.xlu0 %v2202_v1  ;;  %629 = vmatprep.subr.bf16.mxu0 %v1981_v7  ;;  %v1984_v13 = vld [vmem:[#allocation3 + $0x4] ss:$8 sps:$4 sm:$0xff]   ;;  %v1986_v14 = vld [vmem:[#allocation3] ss:$8 sps:$4 sm:$0xff]  }
  0x57   : > { %v446_v5 = vunpack.c.0.s8 %v445_v3  ;;  %630 = vmatpush1.bf16.msra.mxu0 %v1983_v8  ;;  %911 = vmatprep.subr.bf16.mxu1 %v1984_v13  ;;  %v1989_v20 = vld [vmem:[#allocation3 + $0x10] ss:$8 sps:$4 sm:$0xff]   ;;  %v1990_v25 = vld [vmem:[#allocation3 + $0x24] ss:$8 sps:$4 sm:$0xff]   ;;  %v1992_v35 = vld [vmem:[#allocation3 + $0x20] ss:$8 sps:$4 sm:$0xff]  }
  0x58   : > { %s1741_s14 = sshll.u32 %s424_s13, 2  ;;  %v2418_v11 = vsub.s32 0, %v2404_v4  ;;  %1139 = vmatprep.subr.bf16.mxu0 %v2202_v1  ;;  %912 = vmatpush1.bf16.msra.mxu1 %v1986_v14  ;;  %v1993_v40 = vld [vmem:[#allocation3 + $0x34] ss:$8 sps:$4 sm:$0xff]   ;;  %v1995_v44 = vld [vmem:[#allocation3 + $0x30] ss:$8 sps:$4 sm:$0xff]  }
  0x59   : > { %s426_s26 = scalar_lea.vmem %s2642_s0, %s1741_s14  ;;  %v449_v6 = vsub.s32 %v446_v5, %v2404_v4  ;;  %913 = vmatprep.subr.bf16.mxu1 %v1987_v15  ;;  %v1996_v47 = vld [vmem:[#allocation3 + $0x44] ss:$8 sps:$4 sm:$0xff]   ;;  %vm616_vm0 = vcmask 130048   ;;  %v1998_v52 = vld [vmem:[#allocation3 + $0x40] ss:$8 sps:$4 sm:$0xff]   ;;  %vm898_vm1 = vcmask 523264  }
  0x5a   : > { %v1742_v9 = vld.sshfl [vmem:[%s426_s26] sm:$0x33 pattern:$0x75316420]  ;;  %v1999_v54 = vld [vmem:[#allocation3 + $0x54] ss:$8 sps:$4 sm:$0xff]  }
  0x5b   : > { %v450_v10 = vrot.slane %v1742_v9, %v449_v6  ;;  %v443_v12 = vcombine.high %v1742_v9, %v1742_v9  ;;  %v2422_v27 = vld [vmem:[%s426_s26] sm:$0xf]  ;;  %v2001_v61 = vld [vmem:[#allocation3 + $0x50] ss:$8 sps:$4 sm:$0xff]   ;;  %v2002_v62 = vld [vmem:[#allocation3 + $0x64] ss:$8 sps:$4 sm:$0xff]  }
  0x5c   : > { %914 = vmatpush1.bf16.msra.mxu1 %v1989_v20  ;;  %v2004_v7 = vld [vmem:[#allocation3 + $0x60] ss:$8 sps:$4 sm:$0xff]   ;;  %v2005_v8 = vld [vmem:[#allocation3 + $0x74] ss:$8 sps:$4 sm:$0xff]   ;;  %v2007_v14 = vld [vmem:[#allocation3 + $0x70] ss:$8 sps:$4 sm:$0xff]  }
  0x5d   : > { %v461_v16 = vunpack.i.h.s16 %v450_v10  ;;  %v1743_v17 = vpack.i.b16 %v450_v10, %v450_v10  ;;  %v457_v18 = vrot.slane %v443_v12, %v449_v6  ;;  %v458_v19 = vcombine.high %v450_v10, %v450_v10  ;;  %915 = vmatprep.subr.bf16.mxu1 %v1990_v25  ;;  %v2008_v15 = vld [vmem:[#allocation3 + $0x84] ss:$8 sps:$4 sm:$0xff]   ;;  %s1509_s14 = sld [smem:[#allocation2]]  ;;  %s420_s17 = sand.u32 1, %s2178_s20  }
  0x5e   : > { %v2014_v25 = vld [vmem:[#allocation3 + $0xa4] ss:$8 sps:$4 sm:$0xff]   ;;  %vm1591_vm2 = vcmask 1041409   ;;  %vm1593_vm3 = vcmask 1042434   ;;  %vm1595_vm4 = vcmask 1043459   ;;  %vm1597_vm5 = vcmask 1044484  }
  0x5f   : > { %v469_v21 = vpack.i.b16 %v461_v16, %v461_v16  ;;  %v479_v22 = vrot.slane %v1743_v17, %v2418_v11  ;;  %v463_v23 = vunpack.i.h.s16 %v457_v18  ;;  %v1744_v24 = vpack.i.b16 %v457_v18, %v457_v18  ;;  %s1740_s25 = sshll.u32 %s420_s17, 3  ;;  %s1821_s26 = sshll.u32 %s2186_s22, 7 }
  0x60   : > { %v465_v26 = vunpack.i.h.s16 %v458_v19  ;;  %v1745_v32 = vpack.i.b16 %v458_v19, %v458_v19  ;;  %v459_v34 = vcombine.high %v457_v18, %v457_v18  ;;  %916 = vmatpush1.bf16.msra.mxu1 %v1992_v35  ;;  %v2010_v19 = vld [vmem:[#allocation3 + $0x80] ss:$8 sps:$4 sm:$0xff]   ;;  %v2026_v35 = vld [vmem:[#allocation6 + $0x30] sm:$0xff]   ;;  %vm1599_vm6 = vcmask 1045509   ;;  %s422_s12 = scalar_lea.vmem [#allocation8], %s1740_s25  ;;  %s2594_s15 = scalar_lea.hbm %s2653_s11, %s1821_s26 }
  0x61   : > { %v483_v28 = vrot.slane %v469_v21, %v2418_v11  ;;  %v509_v29 = vpack.i.b16 %v479_v22, %v479_v22  ;;  %v471_v30 = vpack.i.b16 %v463_v23, %v463_v23  ;;  %v487_v31 = vrot.slane %v1744_v24, %v2418_v11  ;;  %917 = vmatprep.subr.bf16.mxu1 %v1993_v40  ;;  %v2011_v23 = vld [vmem:[#allocation3 + $0x94] ss:$8 sps:$4 sm:$0xff]   ;;  %v2013_v24 = vld [vmem:[#allocation3 + $0x90] ss:$8 sps:$4 sm:$0xff]   ;;  %s1639_s10 = sshll.u32 %s422_s12, 4  ;;  %s1625_s18 = scalar_lea.sflag [#allocation5], %s420_s17  ;;  %s2596_s10 = int_to_ptr.vmem [resolvable:$true] %s1639_s10 }
  0x62   : > { %v473_v33 = vpack.i.b16 %v465_v26, %v465_v26  ;;  %v495_v45 = vrot.slane %v1745_v32, %v2418_v11  ;;  %v467_v46 = vunpack.i.h.s16 %v459_v34  ;;  %v1746_v56 = vpack.i.b16 %v459_v34, %v459_v34  ;;  %v2016_v26 = vld [vmem:[#allocation3 + $0xa0] ss:$8 sps:$4 sm:$0xff]   ;;  %v2023_v32 = vld [vmem:[#allocation6 + $0x18] sm:$0xff]   ;;  %s2108_s16 = scalar_lea.vmem %s2596_s10, 128  ;;  %p2676_p8 = scmp.ne.s32.totalorder %s2667_s28, 0 }
  0x63   : > { %v514_v36 = vrot.slane %v509_v29, %v2418_v11  ;;  %v516_v37 = vpack.i.b16 %v483_v28, %v483_v28  ;;  %v491_v38 = vrot.slane %v471_v30, %v2418_v11  ;;  %v523_v39 = vpack.i.b16 %v487_v31, %v487_v31  ;;  %v2017_v28 = vld [vmem:[#allocation3 + $0xb4] ss:$8 sps:$4 sm:$0xff]   ;;  %v2019_v29 = vld [vmem:[#allocation3 + $0xb0] ss:$8 sps:$4 sm:$0xff]   ;;  %v2021_v30 = vld [vmem:[#allocation6 + $0x8] sm:$0xff]   ;;  %p2109_p13 = scmp.ne.s32.totalorder %s2596_s10, %s2108_s16  ;;  %s2205_s22 = smov [#allocation8]  }
  0x64   : > { %v499_v51 = vrot.slane %v473_v33, %v2418_v11  ;;  %v537_v55 = vpack.i.b16 %v495_v45, %v495_v45  ;;  %v475_v57 = vpack.i.b16 %v467_v46, %v467_v46  ;;  %918 = vmatpush1.bf16.msra.mxu1 %v1995_v44  ;;  %v503_v63 = vrot.slane %v1746_v56, %v2418_v11  ;;  %v2022_v31 = vld [vmem:[#allocation6 + $0x10] sm:$0xff]   ;;  %v2024_v33 = vld [vmem:[#allocation6 + $0x20] sm:$0xff]   ;;  %v2025_v34 = vld [vmem:[#allocation6 + $0x28] sm:$0xff]   ;;  %s2112_s19 = sshll.u32 %s2205_s22, 4  ;;  %s2113_s19 = int_to_ptr.vmem [resolvable:$false] %s2112_s19 }
  0x65   : > { %v521_v41 = vrot.slane %v516_v37, %v2418_v11  ;;  %v564_v42 = vmul.bf16 %v514_v36, %v2422_v27  ;;  %v530_v43 = vpack.i.b16 %v491_v38, %v491_v38  ;;  %v528_v49 = vrot.slane %v523_v39, %v2418_v11  ;;  %919 = vmatprep.subr.bf16.mxu1 %v1996_v47  ;;  %v2027_v36 = vld [vmem:[#allocation6 + $0x38] sm:$0xff]   ;;  %v2028_v37 = vld [vmem:[#allocation6 + $0x40] sm:$0xff]   ;;  %p2110_p10 = pnand %p2109_p13, %p2676_p8  ;;  %s2114_s21 = scalar_lea.vmem %s2113_s19, 256 }
  0x66   : > { %v544_v60 = vpack.i.b16 %v499_v51, %v499_v51  ;;  %v542_v3 = vrot.slane %v537_v55, %v2418_v11  ;;  %v507_v6 = vrot.slane %v475_v57, %v2418_v11  ;;  %v551_v9 = vpack.i.b16 %v503_v63, %v503_v63  ;;  %v574_v38 = vld [vmem:[%s2644_s2] sm:$0x3]  ;;  %p2115_p2 = scmp.lt.s32.totalorder %s2596_s10, %s2113_s19  ;;  %p2116_p3 = scmp.lt.s32.totalorder %s2114_s21, %s2108_s16 }
  0x67   : > { %v565_v48 = vmul.bf16 %v521_v41, %v2422_v27  ;;  %v535_v50 = vrot.slane %v530_v43, %v2418_v11  ;;  %v566_v58 = vmul.bf16 %v528_v49, %v2422_v27  ;;  %v582_v39 = vsub.s32 1, %v2404_v4  ;;  %p2111_p11 = pneg %p2110_p10 }
  0x68   : > { %920 = vmatpush1.bf16.msra.mxu1 %v1998_v52  ;;  %v549_v5 = vrot.slane %v544_v60, %v2418_v11  ;;  %v568_v10 = vmul.bf16 %v542_v3, %v2422_v27  ;;  %v558_v13 = vpack.i.b16 %v507_v6, %v507_v6  ;;  %v556_v17 = vrot.slane %v551_v9, %v2418_v11  ;;  %p2117_p5 = por %p2116_p3, %p2115_p2 }
  0x69   : > { %v1747_v53 = vcombine.low %v564_v42, %v565_v48  ;;  %v567_v59 = vmul.bf16 %v535_v50, %v2422_v27  ;;  %921 = vmatprep.subr.bf16.mxu1 %v1999_v54  ;;  %v2468_v40 = vrot.slane %v574_v38, %v2418_v11  ;;  %v2472_v41 = vrot.slane %v574_v38, %v582_v39 }
  0x6a   : > { %v569_v12 = vmul.bf16 %v549_v5, %v2422_v27  ;;  %v563_v18 = vrot.slane %v558_v13, %v2418_v11  ;;  %v570_v20 = vmul.bf16 %v556_v17, %v2422_v27  ;;  %vm1601_vm7 = vcmask 1046534   ;;  %p2118_p6 = pnand %p2117_p5, %p2111_p11 }
  0x6b   : > { %1753 = vmatmul.mubr.msk.bf16.vlgmr.msra.gmra.mrb[0].mxu0 %vm616_vm0, %v1747_v53  ;;  %v1748_v2 = vcombine.low %v566_v58, %v567_v59  ;;  %vm1603_vm8 = vcmask 1047559   ;;  %vm1608_vm11 = vcmask 64512  }
  0x6c   : > { %671 = vmatprep.mubr.bf16.mxu0 %v2202_v1  ;;  %922 = vmatpush1.bf16.msra.mxu1 %v2001_v61  ;;  %v1749_v16 = vcombine.low %v568_v10, %v569_v12  ;;  %v571_v21 = vmul.bf16 %v563_v18, %v2422_v27  ;;  %v2020_v27 = vld [vmem:[#allocation6] sm:$0xff]  }
  0x6d   : > { %923 = vmatprep.subr.bf16.mxu1 %v2002_v62  ;;  %1140 = vmatpush1.bf16.msra.mxu0 %v2020_v27 }
  0x6e   : > { %v1750_v22 = vcombine.low %v570_v20, %v571_v21  ;;  %1141 = vmatprep.subr.bf16.mxu0 %v2202_v1 }
  0x70   : > { %924 = vmatpush1.bf16.msra.mxu1 %v2004_v7 }
  0x71   : > { %925 = vmatprep.subr.bf16.mxu1 %v2005_v8  ;;  %1142 = vmatpush1.bf16.msra.mxu0 %v2021_v30 }
  0x72   : > { %1143 = vmatprep.subr.bf16.mxu0 %v2202_v1 }
  0x73   : > { %1754 = vmatmul.mubr.msk.bf16.gmra.mrb[4].mxu0 %vm616_vm0, %v1748_v2 }
  0x74   : > { %681 = vmatprep.mubr.bf16.mxu0 %v2202_v1  ;;  %926 = vmatpush1.bf16.msra.mxu1 %v2007_v14 }
  0x75   : > { %927 = vmatprep.subr.bf16.mxu1 %v2008_v15  ;;  %1144 = vmatpush1.bf16.msra.mxu0 %v2022_v31 }
  0x76   : > { %1145 = vmatprep.subr.bf16.mxu0 %v2202_v1 }
  0x78   : > { %928 = vmatpush1.bf16.msra.mxu1 %v2010_v19 }
  0x79   : > { %929 = vmatprep.subr.bf16.mxu1 %v2011_v23  ;;  %1146 = vmatpush1.bf16.msra.mxu0 %v2023_v32 }
  0x7a   : > { %1147 = vmatprep.subr.bf16.mxu0 %v2202_v1 }
  0x7b   : > { %1755 = vmatmul.mubr.msk.bf16.gmra.mrb[8].mxu0 %vm616_vm0, %v1749_v16 }
  0x7c   : > { %691 = vmatprep.mubr.bf16.mxu0 %v2202_v1  ;;  %930 = vmatpush1.bf16.msra.mxu1 %v2013_v24 }
  0x7d   : > { %931 = vmatprep.subr.bf16.mxu1 %v2014_v25  ;;  %1148 = vmatpush1.bf16.msra.mxu0 %v2024_v33 }
  0x7e   : > { %1149 = vmatprep.subr.bf16.mxu0 %v2202_v1 }
  0x80   : > { %932 = vmatpush1.bf16.msra.mxu1 %v2016_v26 }
  0x81   : > { %933 = vmatprep.subr.bf16.mxu1 %v2017_v28  ;;  %1150 = vmatpush1.bf16.msra.mxu0 %v2025_v34 }
  0x82   : > { %1151 = vmatprep.subr.bf16.mxu0 %v2202_v1 }
  0x83   : > { %1756 = vmatmul.mubr.msk.bf16.gmra.mrb[12].mxu0 %vm616_vm0, %v1750_v22 }
  0x84   : > { %934 = vmatpush1.bf16.msra.mxu1 %v2019_v29 }
  0x85   : > { %1152 = vmatpush1.bf16.msra.mxu0 %v2026_v35 }
  0x86   : > { %1153 = vmatprep.subr.bf16.mxu0 %v2202_v1 }
  0x89   : > { %1154 = vmatpush1.bf16.msra.mxu0 %v2027_v36 }
  0x8a   : > { %1155 = vmatprep.subr.bf16.mxu0 %v2202_v1 }
  0x8d   : > { %1156 = vmatpush1.bf16.msra.mxu0 %v2028_v37 }
  0x8e   : > { %1157 = vmatprep.subr.bf16.mxu0 %v2202_v1 }
 0x13e   : > { %v663_v42 = vpop.f32.mrb[0].mxu0 }
 0x13f   : > { %v664_v43 = vadd.f32 %v663_v42, %v2468_v40  ;;  %v665_v44 = vpop.f32.mrb[1].mxu0 }
 0x140   : > { %v666_v45 = vadd.f32 %v665_v44, %v2472_v41  ;;  %v667_v46 = vpop.f32.mrb[2].mxu0 }
 0x141   : > { %v702_v47 = vmul.f32 0.01, %v664_v43  ;;  %v668_v48 = vadd.f32 %v667_v46, %v2468_v40  ;;  %v669_v49 = vpop.f32.mrb[3].mxu0 }
 0x142   : > { %v703_v50 = vmul.f32 0.01, %v666_v45  ;;  %v670_v51 = vadd.f32 %v669_v49, %v2472_v41 }
 0x143   : > { %v704_v52 = vmul.f32 0.01, %v668_v48  ;;  %v718_v54 = vmax.f32 %v664_v43, %v702_v47 }
 0x144   : > { %v705_v53 = vmul.f32 0.01, %v670_v51  ;;  %v719_v56 = vmax.f32 %v666_v45, %v703_v50 }
 0x145   : > { %v720_v55 = vmax.f32 %v668_v48, %v704_v52 }
 0x146   : > { %v721_v57 = vmax.f32 %v670_v51, %v705_v53  ;;  %v673_v58 = vpop.f32.mrb[4].mxu0 }
 0x147   : > { %v674_v59 = vadd.f32 %v673_v58, %v2468_v40  ;;  %v675_v60 = vpop.f32.mrb[5].mxu0  ;;  %v734_v61 = vpack.c.bf16 %v720_v55, %v718_v54  ;;  %v2032_v58 = vld [vmem:[%s2649_s7] sm:$0xff]  }
 0x148   : > { %v676_v62 = vadd.f32 %v675_v60, %v2472_v41  ;;  %v677_v63 = vpop.f32.mrb[6].mxu0  ;;  %v735_v2 = vpack.c.bf16 %v721_v57, %v719_v56  ;;  %v2029_v57 = vld [vmem:[#allocation6 + $0x48] sm:$0xff]   ;;  %1848 = vmatprep.subr.bf16.mxu1 %v2032_v58  ;;  %v2034_v60 = vld [vmem:[%s2649_s7 + $0x10] sm:$0xff]  }
 0x149   : > { %v706_v3 = vmul.f32 0.01, %v674_v59  ;;  %v678_v5 = vadd.f32 %v677_v63, %v2468_v40  ;;  %v679_v6 = vpop.f32.mrb[7].mxu0  ;;  %1158 = vmatpush1.bf16.msra.mxu0 %v2029_v57 }
 0x14a   : > { %v707_v7 = vmul.f32 0.01, %v676_v62  ;;  %v680_v8 = vadd.f32 %v679_v6, %v2472_v41  ;;  %1781 = vmatprep.mubr.msk.bf16.mxu1 %vm898_vm1, %v735_v2  ;;  %1159 = vmatprep.subr.bf16.mxu0 %v2202_v1 }
 0x14b   : > { %v708_v9 = vmul.f32 0.01, %v678_v5  ;;  %944 = vmatmul.mubr.bf16.vlgmr.msra.gmra.mrb[0].mxu1 %v734_v61  ;;  %v722_v12 = vmax.f32 %v674_v59, %v706_v3  ;;  %v2033_v59 = vld [vmem:[%s2649_s7 + $0x8] sm:$0xff]   ;;  %v766_v61 = vld [vmem:[%s2646_s4] sm:$0x3] }
 0x14c   : > { %v709_v10 = vmul.f32 0.01, %v680_v8  ;;  %v723_v14 = vmax.f32 %v676_v62, %v707_v7  ;;  %1849 = vmatpush3.bf16.msra.mxu1 %v2032_v58  ;;  %v2512_v62 = vrot.slane %v766_v61, %v2418_v11  ;;  %v2516_v63 = vrot.slane %v766_v61, %v582_v39 }
 0x14d   : > { %v724_v13 = vmax.f32 %v678_v5, %v708_v9  ;;  %1850 = vmatprep.subr.bf16.mxu1 %v2033_v59 }
 0x14e   : > { %v725_v15 = vmax.f32 %v680_v8, %v709_v10  ;;  %v683_v16 = vpop.f32.mrb[8].mxu0 }
 0x14f   : > { %v684_v17 = vadd.f32 %v683_v16, %v2468_v40  ;;  %v685_v18 = vpop.f32.mrb[9].mxu0  ;;  %v736_v19 = vpack.c.bf16 %v724_v13, %v722_v12 }
 0x150   : > { %v737_v20 = vpack.c.bf16 %v725_v15, %v723_v14  ;;  %v686_v21 = vadd.f32 %v685_v18, %v2472_v41  ;;  %v687_v22 = vpop.f32.mrb[10].mxu0  ;;  %1851 = vmatpush3.bf16.msra.mxu1 %v2033_v59 }
 0x151   : > { %v710_v23 = vmul.f32 0.01, %v684_v17  ;;  %v688_v24 = vadd.f32 %v687_v22, %v2468_v40  ;;  %v689_v25 = vpop.f32.mrb[11].mxu0  ;;  %1852 = vmatprep.subr.bf16.mxu1 %v2034_v60 }
 0x152   : > { %v711_v26 = vmul.f32 0.01, %v686_v21  ;;  %v690_v28 = vadd.f32 %v689_v25, %v2472_v41  ;;  %1782 = vmatprep.mubr.msk.bf16.mxu1 %vm898_vm1, %v737_v20 }
 0x153   : > { %v712_v29 = vmul.f32 0.01, %v688_v24  ;;  %954 = vmatmul.mubr.bf16.gmra.mrb[4].mxu1 %v736_v19  ;;  %v726_v30 = vmax.f32 %v684_v17, %v710_v23 }
 0x154   : > { %v713_v27 = vmul.f32 0.01, %v690_v28  ;;  %v727_v32 = vmax.f32 %v686_v21, %v711_v26  ;;  %1853 = vmatpush3.bf16.msra.mxu1 %v2034_v60 }
 0x155   : > { %v728_v31 = vmax.f32 %v688_v24, %v712_v29 }
 0x156   : > { %v729_v33 = vmax.f32 %v690_v28, %v713_v27  ;;  %v693_v34 = vpop.f32.mrb[12].mxu0 }
 0x157   : > { %v694_v35 = vadd.f32 %v693_v34, %v2468_v40  ;;  %v695_v36 = vpop.f32.mrb[13].mxu0  ;;  %v738_v37 = vpack.c.bf16 %v728_v31, %v726_v30 }
 0x158   : > { %v739_v38 = vpack.c.bf16 %v729_v33, %v727_v32  ;;  %v696_v42 = vadd.f32 %v695_v36, %v2472_v41  ;;  %v697_v43 = vpop.f32.mrb[14].mxu0 }
 0x159   : > { %v714_v44 = vmul.f32 0.01, %v694_v35  ;;  %v698_v45 = vadd.f32 %v697_v43, %v2468_v40  ;;  %v699_v46 = vpop.f32.mrb[15].mxu0  ;;  %v2030_v40 = vld [vmem:[#allocation6 + $0x50] sm:$0xff]  }
 0x15a   : > { %v715_v47 = vmul.f32 0.01, %v696_v42  ;;  %v700_v48 = vadd.f32 %v699_v46, %v2472_v41  ;;  %1783 = vmatprep.mubr.msk.bf16.mxu1 %vm898_vm1, %v739_v38  ;;  %1160 = vmatpush1.bf16.msra.mxu0 %v2030_v40  ;;  %v2031_v41 = vld [vmem:[#allocation6 + $0x58] sm:$0xff]  }
 0x15b   : > { %v716_v49 = vmul.f32 0.01, %v698_v45  ;;  %964 = vmatmul.mubr.bf16.gmra.mrb[8].mxu1 %v738_v37  ;;  %v730_v51 = vmax.f32 %v694_v35, %v714_v44  ;;  %1161 = vmatprep.subr.bf16.mxu0 %v2202_v1  ;;  %v2035_v1 = vld [vmem:[%s2649_s7 + $0x18] sm:$0xff]  }
 0x15c   : > { %v717_v50 = vmul.f32 0.01, %v700_v48  ;;  %v731_v53 = vmax.f32 %v696_v42, %v715_v47  ;;  %1854 = vmatprep.subr.bf16.mxu1 %v2035_v1 }
 0x15d   : > { %v732_v52 = vmax.f32 %v698_v45, %v716_v49  ;;  %1855 = vmatpush3.bf16.msra.mxu1 %v2035_v1 }
 0x15e   : > { %v733_v54 = vmax.f32 %v700_v48, %v717_v50  ;;  %1162 = vmatpush1.bf16.msra.mxu0 %v2031_v41 }
 0x15f   : > { %v740_v55 = vpack.c.bf16 %v732_v52, %v730_v51 }
 0x160   : > { %v741_v56 = vpack.c.bf16 %v733_v54, %v731_v53 }
 0x162   : > { %1784 = vmatprep.mubr.msk.bf16.mxu1 %vm898_vm1, %v741_v56 }
 0x163   : > { %974 = vmatmul.mubr.bf16.gmra.mrb[12].mxu1 %v740_v55 }
 0x21e   : > { %v945_v2 = vpop.f32.mrb[0].mxu1 }
 0x21f   : > { %v946_v3 = vadd.f32 %v945_v2, %v2512_v62  ;;  %v947_v5 = vpop.f32.mrb[1].mxu1 }
 0x220   : > { %v948_v6 = vadd.f32 %v947_v5, %v2516_v63  ;;  %v949_v7 = vpop.f32.mrb[2].mxu1 }
 0x221   : > { %v984_v8 = vmul.f32 0.01, %v946_v3  ;;  %v950_v9 = vadd.f32 %v949_v7, %v2512_v62  ;;  %v951_v10 = vpop.f32.mrb[3].mxu1 }
 0x222   : > { %v985_v12 = vmul.f32 0.01, %v948_v6  ;;  %v952_v13 = vadd.f32 %v951_v10, %v2516_v63 }
 0x223   : > { %v986_v11 = vmul.f32 0.01, %v950_v9  ;;  %v1000_v15 = vmax.f32 %v946_v3, %v984_v8 }
 0x224   : > { %v987_v14 = vmul.f32 0.01, %v952_v13  ;;  %v1001_v39 = vmax.f32 %v948_v6, %v985_v12 }
 0x225   : > { %v1002_v16 = vmax.f32 %v950_v9, %v986_v11 }
 0x226   : > { %v1003_v17 = vmax.f32 %v952_v13, %v987_v14  ;;  %v955_v18 = vpop.f32.mrb[4].mxu1 }
 0x227   : > { %v1016_v19 = vpack.c.bf16 %v1002_v16, %v1000_v15  ;;  %v956_v20 = vadd.f32 %v955_v18, %v2512_v62  ;;  %v957_v21 = vpop.f32.mrb[5].mxu1  ;;  %v2038_v15 = vld [vmem:[%s2649_s7 + $0x30] sm:$0xff]   ;;  %v2039_v16 = vld [vmem:[%s2649_s7 + $0x38] sm:$0xff]  }
 0x228   : > { %v1017_v22 = vpack.c.bf16 %v1003_v17, %v1001_v39  ;;  %v958_v23 = vadd.f32 %v957_v21, %v2516_v63  ;;  %v959_v24 = vpop.f32.mrb[6].mxu1  ;;  %v2040_v39 = vld [vmem:[%s2651_s9] sm:$0xff]   ;;  %v2041_v17 = vld [vmem:[%s2651_s9 + $0x8] sm:$0xff]   ;;  %v2042_v18 = vld [vmem:[%s2651_s9 + $0x10] sm:$0xff]  }
 0x229   : > { %v988_v25 = vmul.f32 0.01, %v956_v20  ;;  %v960_v26 = vadd.f32 %v959_v24, %v2512_v62  ;;  %v961_v28 = vpop.f32.mrb[7].mxu1  ;;  %1872 = vmatprep.subr.bf16.mxu0 %v2040_v39  ;;  %v1785_v21 = vld [vmem:[%s2648_s6] ss:$0 sm:$0xff] }
 0x22a   : > { %v989_v29 = vmul.f32 0.01, %v958_v23  ;;  %v962_v27 = vadd.f32 %v961_v28, %v2516_v63  ;;  %1798 = vmatprep.mubr.msk.bf16.mxu0 %vm898_vm1, %v1017_v22 }
 0x22b   : > { %v990_v30 = vmul.f32 0.01, %v960_v26  ;;  %1172 = vmatmul.mubr.bf16.vlgmr.msra.gmra.mrb[16].mxu0 %v1016_v19  ;;  %v1004_v32 = vmax.f32 %v956_v20, %v988_v25  ;;  %v2043_v19 = vld [vmem:[%s2651_s9 + $0x18] sm:$0xff]   ;;  %v2044_v20 = vld [vmem:[%s2651_s9 + $0x20] sm:$0xff]  }
 0x22c   : > { %v991_v31 = vmul.f32 0.01, %v962_v27  ;;  %v1005_v34 = vmax.f32 %v958_v23, %v989_v29  ;;  %1873 = vmatpush3.bf16.msra.mxu0 %v2040_v39 }
 0x22d   : > { %v1006_v33 = vmax.f32 %v960_v26, %v990_v30  ;;  %1874 = vmatprep.subr.bf16.mxu0 %v2041_v17 }
 0x22e   : > { %v1007_v35 = vmax.f32 %v962_v27, %v991_v31  ;;  %v965_v36 = vpop.f32.mrb[8].mxu1 }
 0x22f   : > { %v966_v37 = vadd.f32 %v965_v36, %v2512_v62  ;;  %v967_v38 = vpop.f32.mrb[9].mxu1  ;;  %v1018_v42 = vpack.c.bf16 %v1006_v33, %v1004_v32 }
 0x230   : > { %v1019_v43 = vpack.c.bf16 %v1007_v35, %v1005_v34  ;;  %v968_v44 = vadd.f32 %v967_v38, %v2516_v63  ;;  %v969_v45 = vpop.f32.mrb[10].mxu1  ;;  %1875 = vmatpush3.bf16.msra.mxu0 %v2041_v17 }
 0x231   : > { %v992_v46 = vmul.f32 0.01, %v966_v37  ;;  %v970_v47 = vadd.f32 %v969_v45, %v2512_v62  ;;  %v971_v48 = vpop.f32.mrb[11].mxu1  ;;  %1876 = vmatprep.subr.bf16.mxu0 %v2042_v18 }
 0x232   : > { %v993_v49 = vmul.f32 0.01, %v968_v44  ;;  %v972_v50 = vadd.f32 %v971_v48, %v2516_v63  ;;  %1799 = vmatprep.mubr.msk.bf16.mxu0 %vm898_vm1, %v1019_v43 }
 0x233   : > { %v994_v51 = vmul.f32 0.01, %v970_v47  ;;  %1180 = vmatmul.mubr.bf16.gmra.mrb[20].mxu0 %v1018_v42  ;;  %v1008_v53 = vmax.f32 %v966_v37, %v992_v46 }
 0x234   : > { %v995_v52 = vmul.f32 0.01, %v972_v50  ;;  %v1009_v55 = vmax.f32 %v968_v44, %v993_v49  ;;  %1877 = vmatpush3.bf16.msra.mxu0 %v2042_v18 }
 0x235   : > { %v1010_v54 = vmax.f32 %v970_v47, %v994_v51  ;;  %1878 = vmatprep.subr.bf16.mxu0 %v2043_v19 }
 0x236   : > { %v1011_v56 = vmax.f32 %v972_v50, %v995_v52  ;;  %v975_v57 = vpop.f32.mrb[12].mxu1 }
 0x237   : > { %v976_v40 = vadd.f32 %v975_v57, %v2512_v62  ;;  %v977_v41 = vpop.f32.mrb[13].mxu1  ;;  %v1020_v58 = vpack.c.bf16 %v1010_v54, %v1008_v53 }
 0x238   : > { %v1021_v59 = vpack.c.bf16 %v1011_v56, %v1009_v55  ;;  %v978_v60 = vadd.f32 %v977_v41, %v2516_v63  ;;  %v979_v1 = vpop.f32.mrb[14].mxu1  ;;  %1879 = vmatpush3.bf16.msra.mxu0 %v2043_v19 }
 0x239   : > { %v996_v61 = vmul.f32 0.01, %v976_v40  ;;  %v980_v2 = vadd.f32 %v979_v1, %v2512_v62  ;;  %v981_v3 = vpop.f32.mrb[15].mxu1  ;;  %v2036_v62 = vld [vmem:[%s2649_s7 + $0x20] sm:$0xff]   ;;  %1880 = vmatprep.subr.bf16.mxu0 %v2044_v20 }
 0x23a   : > { %v997_v5 = vmul.f32 0.01, %v978_v60  ;;  %v982_v6 = vadd.f32 %v981_v3, %v2516_v63  ;;  %1800 = vmatprep.mubr.msk.bf16.mxu0 %vm898_vm1, %v1021_v59  ;;  %1856 = vmatprep.subr.bf16.mxu1 %v2036_v62  ;;  %v2037_v63 = vld [vmem:[%s2649_s7 + $0x28] sm:$0xff]  }
 0x23b   : > { %v998_v7 = vmul.f32 0.01, %v980_v2  ;;  %1188 = vmatmul.mubr.bf16.gmra.mrb[24].mxu0 %v1020_v58  ;;  %v1012_v9 = vmax.f32 %v976_v40, %v996_v61  ;;  %1857 = vmatpush3.bf16.msra.mxu1 %v2036_v62 }
 0x23c   : > { %v999_v8 = vmul.f32 0.01, %v982_v6  ;;  %v1013_v12 = vmax.f32 %v978_v60, %v997_v5  ;;  %1858 = vmatprep.subr.bf16.mxu1 %v2037_v63  ;;  %1881 = vmatpush3.bf16.msra.mxu0 %v2044_v20 }
 0x23d   : > { %v1014_v10 = vmax.f32 %v980_v2, %v998_v7  ;;  %v2045_v7 = vld [vmem:[%s2651_s9 + $0x28] sm:$0xff]  }
 0x23e   : > { %v1015_v13 = vmax.f32 %v982_v6, %v999_v8  ;;  %1882 = vmatprep.subr.bf16.mxu0 %v2045_v7  ;;  %v2046_v8 = vld [vmem:[%s2651_s9 + $0x30] sm:$0xff]  }
 0x23f   : > { %v1022_v11 = vpack.c.bf16 %v1014_v10, %v1012_v9  ;;  %1859 = vmatpush3.bf16.msra.mxu1 %v2037_v63  ;;  %v2047_v9 = vld [vmem:[%s2651_s9 + $0x38] sm:$0xff]   ;;  %v1802_v10 = vld [vmem:[%s2650_s8] ss:$0 sm:$0xff] }
 0x240   : > { %v1023_v14 = vpack.c.bf16 %v1015_v13, %v1013_v12  ;;  %1860 = vmatprep.subr.bf16.mxu1 %v2038_v15  ;;  %1883 = vmatpush3.bf16.msra.mxu0 %v2045_v7 }
 0x241   : > { %1884 = vmatprep.subr.bf16.mxu0 %v2046_v8 }
 0x242   : > { %1801 = vmatprep.mubr.msk.bf16.mxu0 %vm898_vm1, %v1023_v14 }
 0x243   : > { %1196 = vmatmul.mubr.bf16.gmra.mrb[28].mxu0 %v1022_v11  ;;  %1861 = vmatpush3.bf16.msra.mxu1 %v2038_v15 }
 0x244   : > { %1862 = vmatprep.subr.bf16.mxu1 %v2039_v16  ;;  %1885 = vmatpush3.bf16.msra.mxu0 %v2046_v8 }
 0x245   : > { %1886 = vmatprep.subr.bf16.mxu0 %v2047_v9 }
 0x247   : > { %1863 = vmatpush3.bf16.msra.mxu1 %v2039_v16 }
 0x248   : > { %1887 = vmatpush3.bf16.msra.mxu0 %v2047_v9 }
 0x2fe   : > { %v1173_v22 = vpop.f32.mrb[16].mxu0 }
 0x2ff   : > { %v1174_v23 = vadd.f32 %v1785_v21, %v1173_v22  ;;  %v1175_v24 = vpop.f32.mrb[17].mxu0 }
 0x300   : > { %v1176_v25 = vpop.f32.mrb[18].mxu0 }
 0x301   : > { %v1204_v26 = vmul.f32 0.01, %v1174_v23  ;;  %v1177_v28 = vadd.f32 %v1785_v21, %v1176_v25  ;;  %v1178_v29 = vpop.f32.mrb[19].mxu0 }
 0x303   : > { %v1205_v27 = vmul.f32 0.01, %v1177_v28  ;;  %v1212_v30 = vmax.f32 %v1174_v23, %v1204_v26 }
 0x305   : > { %v1213_v31 = vmax.f32 %v1177_v28, %v1205_v27 }
 0x306   : > { %v1181_v32 = vpop.f32.mrb[20].mxu0 }
 0x307   : > { %v1182_v33 = vadd.f32 %v1785_v21, %v1181_v32  ;;  %v1183_v34 = vpop.f32.mrb[21].mxu0  ;;  %v1220_v35 = vpack.c.bf16 %v1213_v31, %v1212_v30 }
 0x308   : > { %v1184_v36 = vpop.f32.mrb[22].mxu0 }
 0x309   : > { %v1206_v37 = vmul.f32 0.01, %v1182_v33  ;;  %v1185_v38 = vadd.f32 %v1785_v21, %v1184_v36  ;;  %v1186_v42 = vpop.f32.mrb[23].mxu0  ;;  %1864 = vmatprep.mubr.bf16.mxu1 %v1220_v35 }
 0x30b   : > { %v1207_v43 = vmul.f32 0.01, %v1185_v38  ;;  %v1214_v44 = vmax.f32 %v1182_v33, %v1206_v37 }
 0x30d   : > { %v1215_v45 = vmax.f32 %v1185_v38, %v1207_v43 }
 0x30e   : > { %v1189_v46 = vpop.f32.mrb[24].mxu0 }
 0x30f   : > { %v1221_v47 = vpack.c.bf16 %v1215_v45, %v1214_v44  ;;  %v1190_v48 = vadd.f32 %v1785_v21, %v1189_v46  ;;  %v1191_v49 = vpop.f32.mrb[25].mxu0 }
 0x310   : > { %v1192_v50 = vpop.f32.mrb[26].mxu0 }
 0x311   : > { %v1208_v51 = vmul.f32 0.01, %v1190_v48  ;;  %v1193_v52 = vadd.f32 %v1785_v21, %v1192_v50  ;;  %v1194_v53 = vpop.f32.mrb[27].mxu0  ;;  %1865 = vmatmul.mubr.bf16.vlgmr.msra.gmra.mrb[16].mxu1 %v1221_v47  ;;  %v1510_v47 = vstv %s1509_s14 }
 0x313   : > { %v1209_v54 = vmul.f32 0.01, %v1193_v52  ;;  %v1216_v55 = vmax.f32 %v1190_v48, %v1208_v51 }
 0x315   : > { %v1217_v56 = vmax.f32 %v1193_v52, %v1209_v54 }
 0x316   : > { %v1197_v57 = vpop.f32.mrb[28].mxu0 }
 0x317   : > { %v1198_v40 = vadd.f32 %v1785_v21, %v1197_v57  ;;  %v1199_v41 = vpop.f32.mrb[29].mxu0  ;;  %v1222_v58 = vpack.c.bf16 %v1217_v56, %v1216_v55 }
 0x318   : > { %v1200_v59 = vpop.f32.mrb[30].mxu0 }
 0x319   : > { %v1210_v60 = vmul.f32 0.01, %v1198_v40  ;;  %v1201_v1 = vadd.f32 %v1785_v21, %v1200_v59  ;;  %v1202_v61 = vpop.f32.mrb[31].mxu0  ;;  %1868 = vmatprep.mubr.bf16.mxu1 %v1222_v58 }
 0x31b   : > { %v1211_v2 = vmul.f32 0.01, %v1201_v1  ;;  %v1218_v3 = vmax.f32 %v1198_v40, %v1210_v60 }
 0x31d   : > { %v1219_v5 = vmax.f32 %v1201_v1, %v1211_v2  ;;  %v1524_v2 = vand.u32 127, %v447_v0 }
 0x31f   : > { %v1223_v6 = vpack.c.bf16 %v1219_v5, %v1218_v3  ;;  %v1561_v5 = vsub.s32 %v1524_v2, %v2404_v4  ;;  %vm1525_vm9 = vcmp.eq.s32.totalorder %v2404_v4, %v1524_v2  ;;  %vm1526_vm10 = vcmp.lt.s32.totalorder %v1524_v2, 8 }
 0x321   : > { %1869 = vmatmul.mubr.bf16.gmra.mrb[20].mxu1 %v1223_v6 }
 0x3e4   : > { %v1866_v12 = vpop.f32.mrb[16].mxu1 }
 0x3e5   : > { %v1338_v13 = vadd.f32 %v1866_v12, %v1802_v10  ;;  %v1329_v11 = vpop.f32.mrb[17].mxu1 }
 0x3e6   : > { %v1330_v14 = vadd.f32 %v1802_v10, %v1329_v11  ;;  %v1867_v62 = vpop.f32.mrb[18].mxu1 }
 0x3e7   : > { %v1362_v63 = vmul.f32 0.01, %v1338_v13  ;;  %v1341_v15 = vadd.f32 %v1867_v62, %v1802_v10  ;;  %v1332_v16 = vpop.f32.mrb[19].mxu1 }
 0x3e8   : > { %v1360_v39 = vmul.f32 0.01, %v1330_v14  ;;  %v1333_v17 = vadd.f32 %v1802_v10, %v1332_v16 }
 0x3e9   : > { %v1363_v18 = vmul.f32 0.01, %v1341_v15  ;;  %v1370_v20 = vmax.f32 %v1338_v13, %v1362_v63 }
 0x3ea   : > { %v1361_v19 = vmul.f32 0.01, %v1333_v17  ;;  %v1368_v22 = vmax.f32 %v1330_v14, %v1360_v39 }
 0x3eb   : > { %v1371_v21 = vmax.f32 %v1341_v15, %v1363_v18 }
 0x3ec   : > { %v1369_v23 = vmax.f32 %v1333_v17, %v1361_v19 }
 0x3ed   : > { %v1377_v24 = vpack.c.bf16 %v1371_v21, %v1370_v20 }
 0x3ee   : > { %v1376_v25 = vpack.c.bf16 %v1369_v23, %v1368_v22 }
 0x3f0   : > { %1888 = vmatprep.mubr.bf16.mxu0 %v1376_v25 }
 0x3f1   : > { %1889 = vmatmul.mubr.bf16.vlgmr.msra.gmra.mrb[32].mxu0 %v1377_v24 }
 0x3f4   : > { %v1870_v26 = vpop.f32.mrb[20].mxu1 }
 0x3f5   : > { %v1354_v28 = vadd.f32 %v1870_v26, %v1802_v10  ;;  %v1345_v29 = vpop.f32.mrb[21].mxu1 }
 0x3f6   : > { %v1346_v27 = vadd.f32 %v1802_v10, %v1345_v29  ;;  %v1871_v30 = vpop.f32.mrb[22].mxu1 }
 0x3f7   : > { %v1366_v31 = vmul.f32 0.01, %v1354_v28  ;;  %v1357_v32 = vadd.f32 %v1871_v30, %v1802_v10  ;;  %v1348_v33 = vpop.f32.mrb[23].mxu1 }
 0x3f8   : > { %v1364_v34 = vmul.f32 0.01, %v1346_v27  ;;  %v1349_v35 = vadd.f32 %v1802_v10, %v1348_v33  ;;  %v2204_v33 = vmov 0.0  }
 0x3f9   : > { %v1367_v36 = vmul.f32 0.01, %v1357_v32  ;;  %v1374_v38 = vmax.f32 %v1354_v28, %v1366_v31 }
 0x3fa   : > { %v1365_v37 = vmul.f32 0.01, %v1349_v35  ;;  %v1372_v43 = vmax.f32 %v1346_v27, %v1364_v34  ;;  %v1819_v34 = vsel %vm1525_vm9, 1.0, %v2204_v33 }
 0x3fb   : > { %v1375_v42 = vmax.f32 %v1357_v32, %v1367_v36 }
 0x3fc   : > { %v1373_v44 = vmax.f32 %v1349_v35, %v1365_v37 }
 0x3fd   : > { %v1379_v45 = vpack.c.bf16 %v1375_v42, %v1374_v38 }
 0x3fe   : > { %v1378_v46 = vpack.c.bf16 %v1373_v44, %v1372_v43 }
 0x400   : > { %1892 = vmatprep.mubr.bf16.mxu0 %v1378_v46 }
 0x401   : > { %1893 = vmatmul.mubr.bf16.gmra.mrb[36].mxu0 %v1379_v45 }
 0x4c4   : > { %v1890_v48 = vpop.f32.mrb[32].mxu0 }
 0x4c5   : > { %v1513_v49 = vadd.f32 %v1890_v48, %v1510_v47  ;;  %v1478_v50 = vpop.f32.mrb[33].mxu0 }
 0x4c6   : > { %v1511_v51 = vadd.f32 %v1510_v47, %v1478_v50  ;;  %v1891_v52 = vpop.f32.mrb[34].mxu0 }
 0x4c7   : > { %1542 = vperm.xlu1 %1979, %v1513_v49   ;;  %v1481_v53 = vpop.f32.mrb[35].mxu0  ;;  %v1514_v54 = vadd.f32 %v1891_v52, %v1510_v47 }
 0x4c8   : > { %1536 = vperm.xlu0 %1980, %v1511_v51   ;;  %v1512_v55 = vadd.f32 %v1510_v47, %v1481_v53 }
 0x4cb   : > { %1545 = vperm.xlu1 %1979, %v1514_v54  }
 0x4cc   : > { %1539 = vperm.xlu0 %1980, %v1512_v55  }
 0x4d4   : > { %v1894_v56 = vpop.f32.mrb[36].mxu0 }
 0x4d5   : > { %v1494_v57 = vpop.f32.mrb[37].mxu0  ;;  %v1517_v60 = vadd.f32 %v1894_v56, %v1510_v47 }
 0x4d6   : > { %v1515_v40 = vadd.f32 %v1510_v47, %v1494_v57  ;;  %v1895_v41 = vpop.f32.mrb[38].mxu0 }
 0x4d7   : > { %v1497_v58 = vpop.f32.mrb[39].mxu0  ;;  %v1518_v1 = vadd.f32 %v1895_v41, %v1510_v47 }
 0x4d8   : > { %v1516_v59 = vadd.f32 %v1510_v47, %v1497_v58  ;;  %1548 = vperm.xlu0 %1980, %v1515_v40  }
 0x4da   : > { %1551 = vperm.xlu1 %1979, %v1516_v59  }
 0x4dc   : > { %1554 = vperm.xlu0 %1980, %v1517_v60  }
 0x4de   : > { %1557 = vperm.xlu1 %1979, %v1518_v1  }
 0x546   : > { %v1543_v6 = vpop.permute.xlu1 %1542 }
 0x547   : > { %v1537_v61 = vpop.permute.xlu0 %1536  ;;  %v1570_v10 = vrot.slane %v1543_v6, %v1561_v5 }
 0x548   : > { %v1562_v8 = vrot.slane %v1537_v61, %v1561_v5 }
 0x54a   : > { %v1546_v12 = vpop.permute.xlu1 %1545 }
 0x54b   : > { %v1540_v3 = vpop.permute.xlu0 %1539  ;;  %v1574_v11 = vrot.slane %v1546_v12, %v1561_v5 }
 0x54c   : > { %v1566_v7 = vrot.slane %v1540_v3, %v1561_v5 }
 0x54e   : > { %v1592_v9 = vsel %vm1591_vm2, %v1566_v7, %v1562_v8 }
 0x54f   : > { %v1594_v13 = vsel %vm1593_vm3, %v1570_v10, %v1592_v9 }
 0x550   : > { %v1596_v63 = vsel %vm1595_vm4, %v1574_v11, %v1594_v13 }
 0x557   : > { %v1549_v14 = vpop.permute.xlu0 %1548 }
 0x558   : > { %v1578_v62 = vrot.slane %v1549_v14, %v1561_v5 }
 0x559   : > { %v1552_v0 = vpop.permute.xlu1 %1551 }
 0x55a   : > { %v1598_v15 = vsel %vm1597_vm5, %v1578_v62, %v1596_v63  ;;  %v1582_v16 = vrot.slane %v1552_v0, %v1561_v5 }
 0x55b   : > { %v1555_v39 = vpop.permute.xlu0 %1554 }
 0x55c   : > { %v1600_v17 = vsel %vm1599_vm6, %v1582_v16, %v1598_v15  ;;  %v1586_v18 = vrot.slane %v1555_v39, %v1561_v5 }
 0x55d   : > { %v1558_v19 = vpop.permute.xlu1 %1557 }
 0x55e   : > { %v1602_v20 = vsel %vm1601_vm7, %v1586_v18, %v1600_v17  ;;  %v1590_v21 = vrot.slane %v1558_v19, %v1561_v5 }
 0x560   : > { %v1604_v22 = vsel %vm1603_vm8, %v1590_v21, %v1602_v20 }
 0x561   : > { %v1606_v23 = vsel %vm1525_vm9, 0.0, %v1604_v22 }
 0x562   : > { %v1607_v24 = vsel %vm1526_vm10, %v1606_v23, -1e+30 }
 0x563   : > { %v1609_v25 = vsel %vm1608_vm11, %v1607_v24, -inf }
 0x564   : > { %1610 = vmax.xlane.f32.xlu0 %v1609_v25 }
 0x5f1   : > { %v1611_v26 = vpop.xlane.xlu0 %1610 }
 0x5f2   : > { %v1612_v28 = vsub.f32 %v1607_v24, %v1611_v26 }
 0x5f4   : > { %v1613_v29 = vmul.f32 1.442695, %v1612_v28 }
 0x5f6   : > { %2048 = vpow2.f32 %v1613_v29 }
 0x600   : > { %v2049_v27 = vpop.eup %2048 }
 0x601   : > { %v1615_v30 = vsel %vm1608_vm11, %v2049_v27, 0.0 }
 0x602   : > { %1616 = vadd.xlane.f32.xlu1 %v1615_v30 }
 0x68f   : > { %v1617_v31 = vpop.xlane.xlu1 %1616 }
 0x690   : > { %2050 = vrcp.f32 %v1617_v31 }
 0x69a   : > { %v2051_v32 = vpop.eup %2050 }
 0x69b   : > { %v1619_v35 = vmul.f32 %v2051_v32, %v2049_v27 }
 0x69d   : > { %v1622_v36 = vadd.f32 %v1819_v34, %v1619_v35 }
 0x69f   : > { %1623 = vst.msk [vmem:[%s422_s12] sm:$0xff] %vm1608_vm11, %v1622_v36 }
 0x6a0   : > { %2121 = shalt.err (!%p2118_p6)
}
 0x6a1   : > { %s2122_s30 = scalar_lea.hbm %s2594_s15, 128  ;;  %s2126_s14 = scalar_lea.hbm %s2653_s11, 256 }
 0x6a2   : > { %p2123_p7 = scmp.ne.s32.totalorder %s2594_s15, %s2122_s30  ;;  %p2127_p0 = scmp.lt.u32.totalorder %s2594_s15, %s2653_s11 }
 0x6a3   : > { %p2128_p1 = scmp.lt.u32.totalorder %s2126_s14, %s2122_s30  ;;  %p2130_p13 = scmp.lt.u32.totalorder %s2122_s30, %s2594_s15 }
 0x6a4   : > { %p2124_p9 = pnand %p2123_p7, %p2676_p8 }
 0x6a5   : > { %p2129_p4 = por %p2128_p1, %p2127_p0 }
 0x6a6   : > { %p2125_p12 = pneg %p2124_p9 }
 0x6a7   : > { %p2131_p10 = por %p2130_p13, %p2129_p4 }
 0x6a9   : > { %p2132_p11 = pnand %p2131_p10, %p2125_p12 }
 0x6ab   : > { %2135 = shalt.err (!%p2132_p11)
}
 0x6ac   : > { %1904 = dma.vmem_to_hbm [thread:$0]  (%p2676_p8), %s2596_s10, 128, %s2594_s15, %s1625_s18  }
 0x6ad PF: > { %s2677_s26 = sld [smem:[#allocation12_spill]]  ;;  %s2678_s12 = sld [smem:[#allocation16_spill]] }
 0x6ae   : > { %p1921_p2 = scmp.ge.s32.totalorder %s2194_s24, 2 }
 0x6b3   : > { %s1651_s27 = sand.u32 1, %s2677_s26   ;;  %p2679_p3 = scmp.ne.s32.totalorder %s2678_s12, 0 }
 0x6b4   : > { %s1652_s29 = scalar_lea.sflag [#allocation5], %s1651_s27 }
 0x6b5   : > { %p1914_p5 = pnand %p1921_p2, %p2679_p3 }
 0x6b7   : > { %2169 = dma.done.wait (!%p1914_p5), %s1652_s29, 128  }
 0x6b8   : > { %2171 = vsyncadd (!%p1914_p5), %s1652_s29, 4294967168  ;;  %s27_s24 = sadd.s32 1, %s2194_s24   ;;  %s2680_s16 = sld [smem:[#allocation13_spill]] }
 0x6b9   : > { %p24_p6 = scmp.ge.s32.totalorder %s27_s24, 4   ;;  %s2681_s21 = sld [smem:[#allocation17_spill]] }
 0x6ba   : > { %s2682_s22 = sld [smem:[#allocation14_spill]]  ;;  %s2683_s23 = sld [smem:[#allocation15_spill]] }
 0x6bb   : > { %s2684_s19 = smov %s2178_s20  ;;  %26 = sbr.rel (!%p24_p6) target bundleno = 8 (0x8), region = 109 }
 0x6be   : > { %s2685_s20 = smov %s2680_s16 }
 0x6c2   :  { %1657 = vsyncpa [#allocation4], 1 }
 0x6c3   :  { %1659 = vsyncpa [#allocation4 + $0x1], 1 }
 0x6c4   :  { %1660 = vsyncpa [#allocation7], 1 }
 0x6c5   :  { %1661 = vsyncpa [#allocation5], 1 }
 0x6c6   :  { %1663 = vsyncpa [#allocation5 + $0x1], 1 }

</bundles_post_ra>
